<compile_context>
chip_gen: v6e
topology: v6e:2x2x1
jax: 0.10.0
libtpu: 0.0.40
codegen_flags: <defaults>
</compile_context>

<pallas_src>
import jax
import jax.numpy as jnp
from jax.experimental import pallas as pl
from jax.experimental.pallas import tpu as pltpu


_F_IN, _H1, _CODE, _H2, _F_OUT = 15, 64, 32, 64, 15
_SUBLANE = 8
_DEFAULT_BLOCK_B = 8192   # rows per grid step; a few MB of VMEM double-buffered


def _round_up(n, m):
    return ((n + m - 1) // m) * m


def _ae_kernel(x_ref,
               w1_ref, b1_ref, w2_ref, b2_ref,
               w3_ref, b3_ref, w4_ref, b4_ref,
               enc_ref, dec_ref):
    # x_ref: [TB, 15] f32 (batch on sublanes, features on lanes); cast in-kernel.
    x = x_ref[...].astype(jnp.bfloat16)

    # encoder: Linear(15, 64) -> Tanh -> Linear(64, 32);   y = x @ W.T + b
    h1 = jnp.tanh(
        jnp.dot(x, w1_ref[...], preferred_element_type=jnp.float32)
        + b1_ref[...])
    enc = (jnp.dot(h1.astype(jnp.bfloat16), w2_ref[...],
                   preferred_element_type=jnp.float32)
           + b2_ref[...])

    # decoder: Linear(32, 64) -> Tanh -> Linear(64, 15)
    h2 = jnp.tanh(
        jnp.dot(enc.astype(jnp.bfloat16), w3_ref[...],
                preferred_element_type=jnp.float32)
        + b3_ref[...])
    dec = (jnp.dot(h2.astype(jnp.bfloat16), w4_ref[...],
                   preferred_element_type=jnp.float32)
           + b4_ref[...])

    enc_ref[...] = enc.astype(enc_ref.dtype)   # [TB, 32]
    dec_ref[...] = dec.astype(dec_ref.dtype)   # [TB, 15]


def e_autoencoder(x, params, *, block_b=_DEFAULT_BLOCK_B,
                  out_dtype=jnp.bfloat16):
    """x: [B, 15] float32. Returns (encoded [B, 32], decoded [B, 15]) out_dtype."""
    B = x.shape[0]
    wt1, b1, wt2, b2, wt3, b3, wt4, b4 = params   # weights [in, out] bf16, biases [1, out] f32

    # Batch tile: sublane-aligned, capped by block_b.  No padding of x; the
    # ragged last block relies on Pallas edge masking.
    b_al = _round_up(B, _SUBLANE)
    tb = min(block_b, b_al)
    if tb == b_al and b_al >= 256:
        # A single oversized block would leave v7x's second TensorCore idle:
        # split the batch into (at least) two grid steps.
        tb = _round_up(pl.cdiv(b_al, 2), _SUBLANE)
    grid = (pl.cdiv(B, tb),)

    def batch_spec(cols):
        return pl.BlockSpec((tb, cols), lambda i: (i, 0))

    def resident_spec(arr):
        # Full-extent block, constant index -> stays VMEM resident, no re-DMA.
        return pl.BlockSpec(arr.shape, lambda i: (0, 0))

    n_w = _F_IN * _H1 + _H1 * _CODE + _CODE * _H2 + _H2 * _F_OUT
    n_b = _H1 + _CODE + _H2 + _F_OUT
    out_itemsize = jnp.dtype(out_dtype).itemsize
    cost = pl.CostEstimate(
        flops=2 * n_w * B,
        transcendentals=(_H1 + _H2) * B,
        bytes_accessed=(B * _F_IN * 4                      # x read (f32)
                        + B * (_CODE + _F_OUT) * out_itemsize  # enc+dec write
                        + n_w * 2 + n_b * 4),               # resident params
    )

    enc, dec = pl.pallas_call(
        _ae_kernel,
        grid=grid,
        in_specs=[
            batch_spec(_F_IN),
            resident_spec(wt1), resident_spec(b1),
            resident_spec(wt2), resident_spec(b2),
            resident_spec(wt3), resident_spec(b3),
            resident_spec(wt4), resident_spec(b4),
        ],
        out_specs=(batch_spec(_CODE), batch_spec(_F_OUT)),
        out_shape=(
            jax.ShapeDtypeStruct((B, _CODE), out_dtype),
            jax.ShapeDtypeStruct((B, _F_OUT), out_dtype),
        ),
        compiler_params=pltpu.CompilerParams(
            dimension_semantics=("parallel",)),
        cost_estimate=cost,
    )(x, wt1, b1, wt2, b2, wt3, b3, wt4, b4)

    return enc, dec


def init_params(key):
    """nn.Linear-style init U(-1/sqrt(fan_in), 1/sqrt(fan_in)).
    Weights stored pre-transposed [in, out] in bf16 (y = x @ Wt + b);
    biases [1, out] f32."""
    dims = [(_F_IN, _H1), (_H1, _CODE), (_CODE, _H2), (_H2, _F_OUT)]
    params = []
    keys = jax.random.split(key, 2 * len(dims))
    for i, (fan_in, fan_out) in enumerate(dims):
        bound = 1.0 / jnp.sqrt(float(fan_in))
        wt = jax.random.uniform(keys[2 * i], (fan_in, fan_out),
                                minval=-bound, maxval=bound, dtype=jnp.float32)
        b = jax.random.uniform(keys[2 * i + 1], (1, fan_out),
                               minval=-bound, maxval=bound, dtype=jnp.float32)
        params += [wt.astype(jnp.bfloat16), b]
    return tuple(params)


def _reference(x, params):
    """Pure-JAX f32 reference (weights dequantized from bf16)."""
    wt1, b1, wt2, b2, wt3, b3, wt4, b4 = params

    def lin(h, wt, b):
        return h @ wt.astype(jnp.float32) + b

    h1 = jnp.tanh(lin(x, wt1, b1))
    enc = lin(h1, wt2, b2)
    h2 = jnp.tanh(lin(enc, wt3, b3))
    dec = lin(h2, wt4, b4)
    return enc, dec


if __name__ == "__main__":
    key = jax.random.PRNGKey(0)
    k_x, k_x2, k_p = jax.random.split(key, 3)
    params = init_params(k_p)

    # Net.forward feeds the eAutoEncoder a batch of 30 exercise vectors.
    # Exercises the single ragged block path (tile of 32 rows, 30 valid).
    B = 30
    x = jax.random.normal(k_x, (B, _F_IN), dtype=jnp.float32)
    encoded, decoded = e_autoencoder(x, params)
    jax.block_until_ready((encoded, decoded))

    enc_ref, dec_ref = _reference(x, params)
    assert encoded.shape == (B, _CODE) and decoded.shape == (B, _F_OUT)
    assert jnp.allclose(encoded.astype(jnp.float32), enc_ref, atol=3e-2, rtol=3e-2)
    assert jnp.allclose(decoded.astype(jnp.float32), dec_ref, atol=3e-2, rtol=3e-2)

    # Larger batch: exercises the two-step grid (v7x dual-core split) with a
    # ragged last block (3000 -> two tiles of 1504, last has 1496 valid rows).
    B2 = 3000
    x2 = jax.random.normal(k_x2, (B2, _F_IN), dtype=jnp.float32)
    enc2, dec2 = e_autoencoder(x2, params)
    jax.block_until_ready((enc2, dec2))

    enc2_ref, dec2_ref = _reference(x2, params)
    assert enc2.shape == (B2, _CODE) and dec2.shape == (B2, _F_OUT)
    assert jnp.allclose(enc2.astype(jnp.float32), enc2_ref, atol=3e-2, rtol=3e-2)
    assert jnp.allclose(dec2.astype(jnp.float32), dec2_ref, atol=3e-2, rtol=3e-2)

    print("KERNEL_OK")
</pallas_src>

<mosaic_0001>
module attributes {stable_mosaic.version = 11 : i64} {
  func.func @_ae_kernel(%arg0: i32, %arg1: memref<32x15xf32, #tpu.memory_space<vmem>>, %arg2: memref<15x64xbf16, #tpu.memory_space<vmem>>, %arg3: memref<1x64xf32, #tpu.memory_space<vmem>>, %arg4: memref<64x32xbf16, #tpu.memory_space<vmem>>, %arg5: memref<1x32xf32, #tpu.memory_space<vmem>>, %arg6: memref<32x64xbf16, #tpu.memory_space<vmem>>, %arg7: memref<1x64xf32, #tpu.memory_space<vmem>>, %arg8: memref<64x15xbf16, #tpu.memory_space<vmem>>, %arg9: memref<1x15xf32, #tpu.memory_space<vmem>>, %arg10: memref<32x32xbf16, #tpu.memory_space<vmem>>, %arg11: memref<32x15xbf16, #tpu.memory_space<vmem>>) attributes {dimension_semantics = [#tpu.dimension_semantics<parallel>], iteration_bounds = array<i64: 1>, scalar_prefetch = 0 : i64, scratch_operands = 0 : i64, tpu.core_type = #tpu.core_type<tc>, window_params = [{transform_indices = @transform_0, window_bounds = array<i64: 32, 15>}, {pipeline_mode = #tpu.pipeline_mode<synchronous>, transform_indices = @transform_1, window_bounds = array<i64: 15, 64>}, {pipeline_mode = #tpu.pipeline_mode<synchronous>, transform_indices = @transform_2, window_bounds = array<i64: 1, 64>}, {pipeline_mode = #tpu.pipeline_mode<synchronous>, transform_indices = @transform_3, window_bounds = array<i64: 64, 32>}, {pipeline_mode = #tpu.pipeline_mode<synchronous>, transform_indices = @transform_4, window_bounds = array<i64: 1, 32>}, {pipeline_mode = #tpu.pipeline_mode<synchronous>, transform_indices = @transform_5, window_bounds = array<i64: 32, 64>}, {pipeline_mode = #tpu.pipeline_mode<synchronous>, transform_indices = @transform_6, window_bounds = array<i64: 1, 64>}, {pipeline_mode = #tpu.pipeline_mode<synchronous>, transform_indices = @transform_7, window_bounds = array<i64: 64, 15>}, {pipeline_mode = #tpu.pipeline_mode<synchronous>, transform_indices = @transform_8, window_bounds = array<i64: 1, 15>}, {transform_indices = @transform_9, window_bounds = array<i64: 32, 32>}, {transform_indices = @transform_10, window_bounds = array<i64: 32, 15>}]} {
    %c0 = arith.constant 0 : index
    %c0_0 = arith.constant 0 : index
    %0 = vector.load %arg1[%c0, %c0_0] : memref<32x15xf32, #tpu.memory_space<vmem>>, vector<32x15xf32>
    %1 = arith.truncf %0 : vector<32x15xf32> to vector<32x15xbf16>
    %c0_1 = arith.constant 0 : index
    %c0_2 = arith.constant 0 : index
    %2 = vector.load %arg2[%c0_1, %c0_2] : memref<15x64xbf16, #tpu.memory_space<vmem>>, vector<15x64xbf16>
    %cst = arith.constant dense<0.000000e+00> : vector<32x64xf32>
    %3 = tpu.matmul %1, %2, %cst {dimension_numbers = #tpu.dot_dimension_numbers<[1], [0], [0], [1], [0, 0, 1, 1], [], []>} : vector<32x15xbf16>, vector<15x64xbf16>, vector<32x64xf32> -> vector<32x64xf32>
    %c0_3 = arith.constant 0 : index
    %c0_4 = arith.constant 0 : index
    %4 = vector.load %arg3[%c0_3, %c0_4] : memref<1x64xf32, #tpu.memory_space<vmem>>, vector<1x64xf32>
    %5 = vector.broadcast %4 : vector<1x64xf32> to vector<32x64xf32>
    %6 = arith.addf %3, %5 : vector<32x64xf32>
    %7 = math.tanh %6 : vector<32x64xf32>
    %8 = arith.truncf %7 : vector<32x64xf32> to vector<32x64xbf16>
    %c0_5 = arith.constant 0 : index
    %c0_6 = arith.constant 0 : index
    %9 = vector.load %arg4[%c0_5, %c0_6] : memref<64x32xbf16, #tpu.memory_space<vmem>>, vector<64x32xbf16>
    %cst_7 = arith.constant dense<0.000000e+00> : vector<32x32xf32>
    %10 = tpu.matmul %8, %9, %cst_7 {dimension_numbers = #tpu.dot_dimension_numbers<[1], [0], [0], [1], [0, 0, 1, 1], [], []>} : vector<32x64xbf16>, vector<64x32xbf16>, vector<32x32xf32> -> vector<32x32xf32>
    %c0_8 = arith.constant 0 : index
    %c0_9 = arith.constant 0 : index
    %11 = vector.load %arg5[%c0_8, %c0_9] : memref<1x32xf32, #tpu.memory_space<vmem>>, vector<1x32xf32>
    %12 = vector.broadcast %11 : vector<1x32xf32> to vector<32x32xf32>
    %13 = arith.addf %10, %12 : vector<32x32xf32>
    %14 = arith.truncf %13 : vector<32x32xf32> to vector<32x32xbf16>
    %c0_10 = arith.constant 0 : index
    %c0_11 = arith.constant 0 : index
    %15 = vector.load %arg6[%c0_10, %c0_11] : memref<32x64xbf16, #tpu.memory_space<vmem>>, vector<32x64xbf16>
    %cst_12 = arith.constant dense<0.000000e+00> : vector<32x64xf32>
    %16 = tpu.matmul %14, %15, %cst_12 {dimension_numbers = #tpu.dot_dimension_numbers<[1], [0], [0], [1], [0, 0, 1, 1], [], []>} : vector<32x32xbf16>, vector<32x64xbf16>, vector<32x64xf32> -> vector<32x64xf32>
    %c0_13 = arith.constant 0 : index
    %c0_14 = arith.constant 0 : index
    %17 = vector.load %arg7[%c0_13, %c0_14] : memref<1x64xf32, #tpu.memory_space<vmem>>, vector<1x64xf32>
    %18 = vector.broadcast %17 : vector<1x64xf32> to vector<32x64xf32>
    %19 = arith.addf %16, %18 : vector<32x64xf32>
    %20 = math.tanh %19 : vector<32x64xf32>
    %21 = arith.truncf %20 : vector<32x64xf32> to vector<32x64xbf16>
    %c0_15 = arith.constant 0 : index
    %c0_16 = arith.constant 0 : index
    %22 = vector.load %arg8[%c0_15, %c0_16] : memref<64x15xbf16, #tpu.memory_space<vmem>>, vector<64x15xbf16>
    %cst_17 = arith.constant dense<0.000000e+00> : vector<32x15xf32>
    %23 = tpu.matmul %21, %22, %cst_17 {dimension_numbers = #tpu.dot_dimension_numbers<[1], [0], [0], [1], [0, 0, 1, 1], [], []>} : vector<32x64xbf16>, vector<64x15xbf16>, vector<32x15xf32> -> vector<32x15xf32>
    %c0_18 = arith.constant 0 : index
    %c0_19 = arith.constant 0 : index
    %24 = vector.load %arg9[%c0_18, %c0_19] : memref<1x15xf32, #tpu.memory_space<vmem>>, vector<1x15xf32>
    %25 = vector.broadcast %24 : vector<1x15xf32> to vector<32x15xf32>
    %26 = arith.addf %23, %25 : vector<32x15xf32>
    %27 = arith.truncf %13 : vector<32x32xf32> to vector<32x32xbf16>
    %c0_20 = arith.constant 0 : index
    %c0_21 = arith.constant 0 : index
    %28 = vector.load %arg10[%c0_20, %c0_21] : memref<32x32xbf16, #tpu.memory_space<vmem>>, vector<32x32xbf16>
    tpu.vector_store %arg10[%c0_20, %c0_21], %27 {strides = array<i32>} : memref<32x32xbf16, #tpu.memory_space<vmem>>, vector<32x32xbf16>,
    %29 = arith.truncf %26 : vector<32x15xf32> to vector<32x15xbf16>
    %c0_22 = arith.constant 0 : index
    %c0_23 = arith.constant 0 : index
    %30 = vector.load %arg11[%c0_22, %c0_23] : memref<32x15xbf16, #tpu.memory_space<vmem>>, vector<32x15xbf16>
    tpu.vector_store %arg11[%c0_22, %c0_23], %29 {strides = array<i32>} : memref<32x15xbf16, #tpu.memory_space<vmem>>, vector<32x15xbf16>,
    return
  }
  func.func @transform_0(%arg0: i32) -> (i32, i32) {
    %c0_i32 = arith.constant 0 : i32
    %c0_i32_0 = arith.constant 0 : i32
    return %arg0, %c0_i32 : i32, i32
  }
  func.func @transform_1(%arg0: i32) -> (i32, i32) {
    %c0_i32 = arith.constant 0 : i32
    %c0_i32_0 = arith.constant 0 : i32
    %c0_i32_1 = arith.constant 0 : i32
    return %c0_i32, %c0_i32_0 : i32, i32
  }
  func.func @transform_2(%arg0: i32) -> (i32, i32) {
    %c0_i32 = arith.constant 0 : i32
    %c0_i32_0 = arith.constant 0 : i32
    %c0_i32_1 = arith.constant 0 : i32
    return %c0_i32, %c0_i32_0 : i32, i32
  }
  func.func @transform_3(%arg0: i32) -> (i32, i32) {
    %c0_i32 = arith.constant 0 : i32
    %c0_i32_0 = arith.constant 0 : i32
    %c0_i32_1 = arith.constant 0 : i32
    return %c0_i32, %c0_i32_0 : i32, i32
  }
  func.func @transform_4(%arg0: i32) -> (i32, i32) {
    %c0_i32 = arith.constant 0 : i32
    %c0_i32_0 = arith.constant 0 : i32
    %c0_i32_1 = arith.constant 0 : i32
    return %c0_i32, %c0_i32_0 : i32, i32
  }
  func.func @transform_5(%arg0: i32) -> (i32, i32) {
    %c0_i32 = arith.constant 0 : i32
    %c0_i32_0 = arith.constant 0 : i32
    %c0_i32_1 = arith.constant 0 : i32
    return %c0_i32, %c0_i32_0 : i32, i32
  }
  func.func @transform_6(%arg0: i32) -> (i32, i32) {
    %c0_i32 = arith.constant 0 : i32
    %c0_i32_0 = arith.constant 0 : i32
    %c0_i32_1 = arith.constant 0 : i32
    return %c0_i32, %c0_i32_0 : i32, i32
  }
  func.func @transform_7(%arg0: i32) -> (i32, i32) {
    %c0_i32 = arith.constant 0 : i32
    %c0_i32_0 = arith.constant 0 : i32
    %c0_i32_1 = arith.constant 0 : i32
    return %c0_i32, %c0_i32_0 : i32, i32
  }
  func.func @transform_8(%arg0: i32) -> (i32, i32) {
    %c0_i32 = arith.constant 0 : i32
    %c0_i32_0 = arith.constant 0 : i32
    %c0_i32_1 = arith.constant 0 : i32
    return %c0_i32, %c0_i32_0 : i32, i32
  }
  func.func @transform_9(%arg0: i32) -> (i32, i32) {
    %c0_i32 = arith.constant 0 : i32
    %c0_i32_0 = arith.constant 0 : i32
    return %arg0, %c0_i32 : i32, i32
  }
  func.func @transform_10(%arg0: i32) -> (i32, i32) {
    %c0_i32 = arith.constant 0 : i32
    %c0_i32_0 = arith.constant 0 : i32
    return %arg0, %c0_i32 : i32, i32
  }
}

</mosaic_0001>

<bundles_post_ra>
// kernel: tpu_custom_call.1
= control target key start
LH: loop header
LB: loop body
LE: loop exit
PB: predicated region body
PF: predicated region fallthrough
CT: control target
= control target key end

     0   :  { %vm63_vm0 = vcmask 1046528   ;;  %vm64_vm1 = vcmask 1047552   ;;  %vm56_vm2 = vcmask 121856   ;;  %v610_v3 = vmov 65535   ;;  %s749_s0 = inlined_call_operand.vmem [shape: f32[30,15], index: 0, kind: input, shape index: {}]   ;;  %s750_s1 = inlined_call_operand.vmem [shape: bf16[15,64], index: 1, kind: input, shape index: {}]   ;;  %s751_s2 = inlined_call_operand.vmem [shape: f32[1,64], index: 2, kind: input, shape index: {}]   ;;  %s752_s3 = inlined_call_operand.vmem [shape: bf16[64,32], index: 3, kind: input, shape index: {}]   ;;  %s753_s4 = inlined_call_operand.vmem [shape: f32[1,32], index: 4, kind: input, shape index: {}]   ;;  %s754_s5 = inlined_call_operand.vmem [shape: bf16[32,64], index: 5, kind: input, shape index: {}]   ;;  %s755_s6 = inlined_call_operand.vmem [shape: f32[1,64], index: 6, kind: input, shape index: {}]   ;;  %s756_s7 = inlined_call_operand.vmem [shape: bf16[64,15], index: 7, kind: input, shape index: {}]   ;;  %s757_s8 = inlined_call_operand.vmem [shape: f32[1,15], index: 8, kind: input, shape index: {}]   ;;  %s758_s9 = inlined_call_operand.hbm [shape: bf16[30,32], index: 9, kind: output, shape index: {0}]   ;;  %s759_s10 = inlined_call_operand.vmem [shape: bf16[30,15], index: 10, kind: output, shape index: {1}]  }
   0x1   :  { %v561_v0 = vld [vmem:[%s750_s1] sm:$0xff]   ;;  %v37_v2 = vld [vmem:[%s749_s0 + $0x8] sm:$0xff]  ;;  %v65_v4 = vsel %vm63_vm0, 4294967295, %v610_v3  ;;  %v38_v6 = vld [vmem:[%s749_s0 + $0x10] sm:$0xff] }
   0x2   :  { %v36_v1 = vld [vmem:[%s749_s0] sm:$0xff]  ;;  %v66_v7 = vsel %vm64_vm1, %v65_v4, 0  ;;  %v39_v8 = vld [vmem:[%s749_s0 + $0x18] sm:$0xff] }
   0x3   :  { %v40_v5 = vpack.c.bf16 %v37_v2, %v36_v1  ;;  %v68_v9 = vand.u32 %v561_v0, %v66_v7  ;;  %v41_v10 = vpack.c.bf16 %v39_v8, %v38_v6 }
   0x5   :  { %521 = vmatprep.mubr.msk.bf16.mxu1 %vm56_vm2, %v40_v5  ;;  %519 = vmatprep.subr.bf16.mxu1 %v68_v9 }
   0x6   :  { %520 = vmatpush3.bf16.msra.mxu1 %v68_v9 }
   0x7   :  { %16 = vsyncpa [#allocation3], 0  ;;  %v562_v11 = vld [vmem:[%s752_s3 + $0x18] sm:$0xff]   ;;  %v563_v12 = vld [vmem:[%s752_s3 + $0x10] sm:$0xff]   ;;  %vm164_vm3 = vcmask 523264   ;;  %vm415_vm4 = vcmask 257024  }
   0x8   :  { %525 = vmatprep.subr.bf16.mxu1 %v562_v11  ;;  %v564_v13 = vld [vmem:[%s752_s3 + $0x8] sm:$0xff]   ;;  %v565_v14 = vld [vmem:[%s752_s3] sm:$0xff]   ;;  %vm245_vm5 = vcmask 261120   ;;  %v568_v47 = vld [vmem:[%s756_s7 + $0x18] sm:$0xff]  }
   0x9   :  { %522 = vmatmul.mubr.msk.bf16.vlgmr.msra.gmra.mxu1 %vm56_vm2, %v41_v10  ;;  %v461_v16 = vld [vmem:[%s751_s2] ss:$0 sm:$0xff]  ;;  %v566_v30 = vld [vmem:[%s754_s5 + $0x8] sm:$0xff]   ;;  %v569_v48 = vld [vmem:[%s756_s7 + $0x10] sm:$0xff]  }
   0xa   :  { %526 = vmatpush3.bf16.msra.mxu1 %v562_v11  ;;  %537 = vmatprep.subr.bf16.mxu0 %v566_v30  ;;  %v567_v31 = vld [vmem:[%s754_s5] sm:$0xff]   ;;  %v570_v49 = vld [vmem:[%s756_s7 + $0x8] sm:$0xff]  }
   0xb   :  { %527 = vmatprep.subr.bf16.mxu1 %v563_v12  ;;  %538 = vmatpush3.bf16.msra.mxu0 %v566_v30  ;;  %v465_v32 = vld [vmem:[%s753_s4] ss:$0 sm:$0xff] }
   0xc   :  { %539 = vmatprep.subr.bf16.mxu0 %v567_v31  ;;  %v571_v50 = vld [vmem:[%s756_s7] sm:$0xff]  }
   0xd   :  { %v472_v52 = vld [vmem:[%s755_s6] ss:$0 sm:$0xff]  ;;  %s611_s6 = smov [#allocation2]  }
   0xe   :  { %528 = vmatpush3.bf16.msra.mxu1 %v563_v12  ;;  %s446_s7 = sshll.u32 %s611_s6, 4  ;;  %s447_s7 = int_to_ptr.vmem [resolvable:$true] %s446_s7 }
   0xf   :  { %529 = vmatprep.subr.bf16.mxu1 %v564_v13  ;;  %540 = vmatpush3.bf16.msra.mxu0 %v567_v31  ;;  %s588_s22 = scalar_lea.vmem %s447_s7, 256  ;;  %p593_p1 = scmp.lt.s32.totalorder %s447_s7, %s447_s7 }
  0x10   :  { %545 = vmatprep.subr.bf16.mxu0 %v568_v47  ;;  %p589_p0 = scmp.ne.s32.totalorder %s447_s7, %s588_s22  ;;  %p594_p2 = scmp.lt.s32.totalorder %s588_s22, %s588_s22 }
  0x12   :  { %530 = vmatpush3.bf16.msra.mxu1 %v564_v13  ;;  %p595_p3 = por %p594_p2, %p593_p1 }
  0x13   :  { %531 = vmatprep.subr.bf16.mxu1 %v565_v14 }
  0x14   :  { %p596_p4 = pnand %p595_p3, %p589_p0 }
  0x16   :  { %532 = vmatpush3.bf16.msra.mxu1 %v565_v14 }
  0xc9   :  { %v523_v15 = vpop.f32.mrf.mxu1 }
  0xca   :  { %v113_v21 = vadd.f32 %v523_v15, %v461_v16 }
  0xcb   :  { %v104_v17 = vpop.f32.mrf.mxu1 }
  0xcc   :  { %v105_v18 = vadd.f32 %v461_v16, %v104_v17 }
  0xcd   :  { %v524_v19 = vpop.f32.mrf.mxu1 }
  0xce   :  { %v116_v20 = vadd.f32 %v524_v19, %v461_v16  ;;  %572 = vtanh.f32 %v105_v18 }
  0xcf   :  { %v107_v22 = vpop.f32.mrf.mxu1 }
  0xd0   :  { %v108_v23 = vadd.f32 %v461_v16, %v107_v22  ;;  %574 = vtanh.f32 %v116_v20 }
  0xd2   :  { %576 = vtanh.f32 %v108_v23 }
  0xd3   :  { %578 = vtanh.f32 %v113_v21 }
  0xdb   :  { %v573_v24 = vpop.eup %572 }
  0xdd   :  { %v575_v25 = vpop.eup %574 }
  0xdf   :  { %v577_v26 = vpop.eup %576 }
  0xe0   :  { %v579_v27 = vpop.eup %578  ;;  %v123_v28 = vpack.c.bf16 %v577_v26, %v573_v24 }
  0xe1   :  { %v124_v29 = vpack.c.bf16 %v575_v25, %v579_v27 }
  0xe2   :  { %533 = vmatprep.mubr.msk.bf16.mxu1 %vm164_vm3, %v123_v28 }
  0xe3   :  { %534 = vmatmul.mubr.msk.bf16.vlgmr.msra.gmra.mxu1 %vm164_vm3, %v124_v29 }
 0x1a3   :  { %v535_v33 = vpop.f32.mrf.mxu1 }
 0x1a4   :  { %v214_v34 = vadd.f32 %v535_v33, %v465_v32 }
 0x1a5   :  { %v205_v35 = vpop.f32.mrf.mxu1 }
 0x1a6   :  { %v494_v36 = vpack.c.bf16 %v214_v34, %v214_v34  ;;  %v206_v37 = vadd.f32 %v465_v32, %v205_v35 }
 0x1a7   :  { %v536_v38 = vpop.f32.mrf.mxu1 }
 0x1a8   :  { %418 = vst.msk [vmem:[#allocation2 + $0x8] sm:$0xf] %vm415_vm4, %v494_v36  ;;  %v492_v39 = vpack.c.bf16 %v206_v37, %v206_v37  ;;  %v217_v40 = vadd.f32 %v536_v38, %v465_v32 }
 0x1a9   :  { %v208_v41 = vpop.f32.mrf.mxu1 }
 0x1aa   :  { %416 = vst.msk [vmem:[#allocation2] sm:$0xf] %vm415_vm4, %v492_v39  ;;  %v495_v42 = vpack.c.bf16 %v217_v40, %v217_v40  ;;  %v209_v43 = vadd.f32 %v465_v32, %v208_v41  ;;  %v221_v46 = vpack.c.bf16 %v217_v40, %v214_v34 }
 0x1ac   :  { %419 = vst.msk [vmem:[#allocation2 + $0xc] sm:$0xf] %vm415_vm4, %v495_v42  ;;  %v493_v44 = vpack.c.bf16 %v209_v43, %v209_v43  ;;  %v220_v45 = vpack.c.bf16 %v209_v43, %v206_v37 }
 0x1ae   :  { %417 = vst.msk [vmem:[#allocation2 + $0x4] sm:$0xf] %vm415_vm4, %v493_v44  ;;  %541 = vmatprep.mubr.msk.bf16.mxu0 %vm245_vm5, %v220_v45 }
 0x1af   :  { %542 = vmatmul.mubr.msk.bf16.vlgmr.msra.gmra.mxu0 %vm245_vm5, %v221_v46 }
 0x1b0   :  { %546 = vmatpush3.bf16.msra.mxu0 %v568_v47 }
 0x1b1   :  { %547 = vmatprep.subr.bf16.mxu0 %v569_v48 }
 0x1b4   :  { %548 = vmatpush3.bf16.msra.mxu0 %v569_v48 }
 0x1b5   :  { %549 = vmatprep.subr.bf16.mxu0 %v570_v49 }
 0x1b8   :  { %550 = vmatpush3.bf16.msra.mxu0 %v570_v49 }
 0x1b9   :  { %551 = vmatprep.subr.bf16.mxu0 %v571_v50 }
 0x1bc   :  { %552 = vmatpush3.bf16.msra.mxu0 %v571_v50 }
 0x26f   :  { %v543_v51 = vpop.f32.mrf.mxu0 }
 0x270   :  { %v295_v57 = vadd.f32 %v543_v51, %v472_v52 }
 0x271   :  { %v286_v53 = vpop.f32.mrf.mxu0 }
 0x272   :  { %v287_v54 = vadd.f32 %v472_v52, %v286_v53 }
 0x273   :  { %v544_v55 = vpop.f32.mrf.mxu0 }
 0x274   :  { %v298_v56 = vadd.f32 %v544_v55, %v472_v52  ;;  %580 = vtanh.f32 %v287_v54 }
 0x275   :  { %v289_v58 = vpop.f32.mrf.mxu0 }
 0x276   :  { %v290_v59 = vadd.f32 %v472_v52, %v289_v58  ;;  %582 = vtanh.f32 %v298_v56 }
 0x278   :  { %584 = vtanh.f32 %v290_v59 }
 0x279   :  { %586 = vtanh.f32 %v295_v57 }
 0x281   :  { %v581_v60 = vpop.eup %580 }
 0x283   :  { %v583_v61 = vpop.eup %582 }
 0x285   :  { %v585_v62 = vpop.eup %584 }
 0x286   :  { %v587_v63 = vpop.eup %586  ;;  %v305_v0 = vpack.c.bf16 %v585_v62, %v581_v60 }
 0x287   :  { %v306_v1 = vpack.c.bf16 %v583_v61, %v587_v63 }
 0x288   :  { %553 = vmatprep.mubr.msk.bf16.mxu0 %vm164_vm3, %v305_v0 }
 0x289   :  { %554 = vmatmul.mubr.msk.bf16.vlgmr.msra.gmra.mxu0 %vm164_vm3, %v306_v1 }
 0x28a   :  { %599 = shalt.err (!%p596_p4)
}
 0x28b   :  { %s612_s23 = smov 64   ;;  %s613_s24 = smov 4   ;;  %v477_v2 = vld [vmem:[%s757_s8] ss:$0 sm:$0xff]  ;;  %vm436_vm6 = vcmask 117760  }
 0x28c   :  { %452 = dma.vmem_to_hbm [thread:$0]  %s447_s7, 256, %s758_s9, [#allocation3], %s612_s23, %s612_s23, %s613_s24  }
 0x349   :  { %v555_v3 = vpop.f32.mrf.mxu0 }
 0x34a   :  { %v395_v4 = vadd.f32 %v555_v3, %v477_v2 }
 0x34b   :  { %v386_v5 = vpop.f32.mrf.mxu0 }
 0x34c   :  { %v498_v6 = vpack.c.bf16 %v395_v4, %v395_v4  ;;  %v387_v7 = vadd.f32 %v477_v2, %v386_v5 }
 0x34d   :  { %v556_v8 = vpop.f32.mrf.mxu0 }
 0x34e   :  { %439 = vst.msk [vmem:[%s759_s10 + $0x8] sm:$0xf] %vm436_vm6, %v498_v6  ;;  %v496_v9 = vpack.c.bf16 %v387_v7, %v387_v7  ;;  %v398_v10 = vadd.f32 %v556_v8, %v477_v2 }
 0x34f   :  { %v389_v11 = vpop.f32.mrf.mxu0 }
 0x350   :  { %437 = vst.msk [vmem:[%s759_s10] sm:$0xf] %vm436_vm6, %v496_v9  ;;  %v499_v12 = vpack.c.bf16 %v398_v10, %v398_v10  ;;  %v390_v13 = vadd.f32 %v477_v2, %v389_v11 }
 0x352   :  { %440 = vst.msk [vmem:[%s759_s10 + $0xc] sm:$0xf] %vm436_vm6, %v499_v12  ;;  %v497_v14 = vpack.c.bf16 %v390_v13, %v390_v13 }
 0x354   :  { %438 = vst.msk [vmem:[%s759_s10 + $0x4] sm:$0xf] %vm436_vm6, %v497_v14 }
 0x355   :  { %608 = dma.done.wait [#allocation3], 256  }
 0x356   :  { %609 = vsyncadd [#allocation3], 4294967040 }
 0x357   :  { %460 = vsyncpa [#allocation3], 1 }

</bundles_post_ra>
